<compile_context>
chip_gen: v7x
topology: tpu7x:2x2x1
jax: 0.10.0
libtpu: 0.0.40
codegen_flags: <defaults>
</compile_context>

<pallas_src>
import functools

import jax
import jax.numpy as jnp
from jax.experimental import pallas as pl
from jax.experimental.pallas import tpu as pltpu


# ---------------------------------------------------------------------------
# Pallas kernel: one MXU matmul + bias per row tile.
# ---------------------------------------------------------------------------
def _tt_kernel(x_ref, w_ref, b_ref, o_ref):
    # x_ref : (TM, hidden)        activation tile
    # w_ref : (hidden, out_dim)   collapsed TT weight (loop-invariant)
    # b_ref : (1, out_dim)        bias
    acc = jnp.dot(x_ref[...], w_ref[...], preferred_element_type=jnp.float32)
    o_ref[...] = (acc + b_ref[...].astype(jnp.float32)).astype(o_ref.dtype)


def _round_up(n, m):
    return ((n + m - 1) // m) * m


# ---------------------------------------------------------------------------
# Wrapper: parameter setup (plain JAX glue) + pallas_call.
# ---------------------------------------------------------------------------
@functools.partial(jax.jit, static_argnames=("in_dims", "tile_m"))
def tt_layer_forward(x, c0, c1, c2, bias, *, in_dims, tile_m=512):
    bs, seq_len, hidden = x.shape
    d1, d2 = in_dims
    assert hidden == d1 * d2, (hidden, in_dims)

    # TT-consistency checks the PyTorch code relies on implicitly.
    r1 = c0.shape[2]
    r2 = c1.shape[2]
    r3 = c2.shape[2]
    assert c0.shape[0] * c0.shape[1] == d1, "core0 must reshape to (in_dims[0], r1)"
    assert c1.shape[0] == r1, "TT rank mismatch between core0 and core1"
    assert c2.shape[0] == r2, "TT rank mismatch between core1 and core2"
    assert c1.shape[1] % d2 == 0, "core1 mode size must be divisible by in_dims[1]"
    a = c1.shape[1] // d2
    g = c2.shape[1]
    out_dim = a * g * r3

    dt = x.dtype
    itemsize = jnp.dtype(dt).itemsize

    # --- parameter setup (plain JAX, traced once) ---------------------------
    # Collapse the loop-invariant TT chain 'bid,ir->bdr' -> 'bdr,rdac->bac'
    # -> 'bdr,rga->bdga' into a single (hidden, out_dim) matrix (the TT
    # reconstruction in the exact input/output flattening order of the module).
    w = jnp.einsum(
        "ir,rdac,cgA->idagA",
        c0.reshape(d1, r1).astype(jnp.float32),
        c1.reshape(r1, d2, a, r2).astype(jnp.float32),
        c2.reshape(r2, g, r3).astype(jnp.float32),
    ).reshape(hidden, out_dim).astype(dt)
    b2 = bias.reshape(1, out_dim).astype(dt)

    # --- row tiling ----------------------------------------------------------
    x_flat = x.reshape(bs * seq_len, hidden)
    B = bs * seq_len

    # tm: as large as possible (per-grid-step overhead ~0.35us), multiple of 16
    # (covers f32 and bf16 sublane tiling), clamped to the (rounded) row count and
    # to a conservative double-buffered VMEM budget so it is safe on the v5e 16 MiB
    # scoped default and on v7x's 64 MiB physical VMEM.
    budget = 12 * 1024 * 1024 - 2 * (hidden * out_dim + out_dim) * itemsize
    per_row = 2 * (hidden + out_dim) * itemsize   # x + out tiles, double-buffered
    vmem_cap = max(16, (budget // per_row) // 16 * 16)
    tm = max(16, min(_round_up(tile_m, 16), _round_up(B, 16), vmem_cap))
    grid = (pl.cdiv(B, tm),)   # padded last tile; OOB output rows are discarded

    out_flat = pl.pallas_call(
        _tt_kernel,
        out_shape=jax.ShapeDtypeStruct((B, out_dim), dt),
        grid_spec=pltpu.PrefetchScalarGridSpec(
            num_scalar_prefetch=0,
            grid=grid,
            in_specs=[
                pl.BlockSpec((tm, hidden), lambda i: (i, 0)),
                pl.BlockSpec((hidden, out_dim), lambda i: (0, 0)),
                pl.BlockSpec((1, out_dim), lambda i: (0, 0)),
            ],
            out_specs=pl.BlockSpec((tm, out_dim), lambda i: (i, 0)),
        ),
        compiler_params=pltpu.CompilerParams(
            dimension_semantics=("parallel",)),
    )(x_flat, w, b2)

    return out_flat.reshape(bs, seq_len, out_dim)


# ---------------------------------------------------------------------------
# Pure-JAX reference: literal transcription of tt_multiply_tt_custom + bias.
# ---------------------------------------------------------------------------
def tt_layer_ref(x, c0, c1, c2, bias, in_dims):
    bs, seq_len, _ = x.shape
    result = x.reshape(bs * seq_len, in_dims[0], -1)
    core = c0.reshape(in_dims[0], c0.shape[2])
    result = jnp.einsum("bid,ir->bdr", result, core)
    # i = 1  (i < len(in_dims))
    result = result.reshape(-1, in_dims[1], c1.shape[0])
    core = c1.reshape(c1.shape[0], in_dims[1], -1, c1.shape[2])
    result = jnp.einsum("bdr,rdac->bac", result, core)
    # i = 2  (i >= len(in_dims))
    result = result.reshape(bs, -1, c2.shape[0])
    core = c2.reshape(c2.shape[0], -1, c2.shape[2])
    result = jnp.einsum("bdr,rga->bdga", result, core)
    return result.reshape(bs, seq_len, -1) + bias


if __name__ == "__main__":
    # Small synthetic configuration consistent with the module:
    #   in_dims = [8, 4]  -> hidden = 32
    #   shapes  = [8, 8, 8], ranks = [1, 4, 4, 1]
    #   TT cores: (1,8,4), (4,8,4), (4,8,1); out_dim = (8/4)*8*1 = 16
    bs, seq_len = 2, 8
    in_dims = (8, 4)
    hidden = in_dims[0] * in_dims[1]
    ranks = (1, 4, 4, 1)
    shapes = (8, 8, 8)

    key = jax.random.PRNGKey(0)
    kx, k0, k1, k2, kb = jax.random.split(key, 5)

    # TODO(synk): the real module derives the cores from an SVD-based TT
    # decomposition of layer.weight (tntorch); here they are deterministic
    # random parameters of the same shapes.
    x = jax.random.normal(kx, (bs, seq_len, hidden), dtype=jnp.float32)
    core0 = jax.random.normal(k0, (ranks[0], shapes[0], ranks[1]), dtype=jnp.float32) * 0.3
    core1 = jax.random.normal(k1, (ranks[1], shapes[1], ranks[2]), dtype=jnp.float32) * 0.3
    core2 = jax.random.normal(k2, (ranks[2], shapes[2], ranks[3]), dtype=jnp.float32) * 0.3
    out_dim = (shapes[1] // in_dims[1]) * shapes[2] * ranks[3]
    bias = jax.random.normal(kb, (out_dim,), dtype=jnp.float32) * 0.1

    # 1) f32, default (large) tile.
    out = jax.block_until_ready(
        tt_layer_forward(x, core0, core1, core2, bias, in_dims=in_dims))
    ref = tt_layer_ref(x, core0, core1, core2, bias, in_dims)
    assert out.shape == (bs, seq_len, out_dim), out.shape
    assert jnp.allclose(out, ref, atol=1e-4, rtol=1e-4), (
        float(jnp.max(jnp.abs(out - ref))))

    # 2) f32, multi-step grid with a padded remainder tile (B = 111, tm = 64).
    bs2, seq2 = 3, 37
    x2 = jax.random.normal(kx, (bs2, seq2, hidden), dtype=jnp.float32)
    out2 = jax.block_until_ready(
        tt_layer_forward(x2, core0, core1, core2, bias, in_dims=in_dims, tile_m=64))
    ref2 = tt_layer_ref(x2, core0, core1, core2, bias, in_dims)
    assert out2.shape == (bs2, seq2, out_dim), out2.shape
    assert jnp.allclose(out2, ref2, atol=1e-4, rtol=1e-4), (
        float(jnp.max(jnp.abs(out2 - ref2))))

    # 3) bf16 activations (fast MXU path on v6e/v7x); looser tolerance vs f32 ref.
    out3 = jax.block_until_ready(
        tt_layer_forward(x.astype(jnp.bfloat16), core0, core1, core2, bias,
                         in_dims=in_dims))
    assert jnp.allclose(out3.astype(jnp.float32), ref, atol=5e-2, rtol=5e-2), (
        float(jnp.max(jnp.abs(out3.astype(jnp.float32) - ref))))

    print("KERNEL_OK")
</pallas_src>

<mosaic_0001>
module attributes {stable_mosaic.version = 11 : i64} {
  func.func @_tt_kernel(%arg0: i32, %arg1: memref<16x32xf32, #tpu.memory_space<vmem>>, %arg2: memref<32x16xf32, #tpu.memory_space<vmem>>, %arg3: memref<1x16xf32, #tpu.memory_space<vmem>>, %arg4: memref<16x16xf32, #tpu.memory_space<vmem>>) attributes {dimension_semantics = [#tpu.dimension_semantics<parallel>], iteration_bounds = array<i64: 1>, scalar_prefetch = 0 : i64, scratch_operands = 0 : i64, tpu.core_type = #tpu.core_type<tc>, window_params = [{transform_indices = @transform_0, window_bounds = array<i64: 16, 32>}, {pipeline_mode = #tpu.pipeline_mode<synchronous>, transform_indices = @transform_1, window_bounds = array<i64: 32, 16>}, {pipeline_mode = #tpu.pipeline_mode<synchronous>, transform_indices = @transform_2, window_bounds = array<i64: 1, 16>}, {transform_indices = @transform_3, window_bounds = array<i64: 16, 16>}]} {
    %c0 = arith.constant 0 : index
    %c0_0 = arith.constant 0 : index
    %0 = vector.load %arg1[%c0, %c0_0] : memref<16x32xf32, #tpu.memory_space<vmem>>, vector<16x32xf32>
    %c0_1 = arith.constant 0 : index
    %c0_2 = arith.constant 0 : index
    %1 = vector.load %arg2[%c0_1, %c0_2] : memref<32x16xf32, #tpu.memory_space<vmem>>, vector<32x16xf32>
    %cst = arith.constant dense<0.000000e+00> : vector<16x16xf32>
    %2 = tpu.matmul %0, %1, %cst {dimension_numbers = #tpu.dot_dimension_numbers<[1], [0], [0], [1], [0, 0, 1, 1], [], []>} : vector<16x32xf32>, vector<32x16xf32>, vector<16x16xf32> -> vector<16x16xf32>
    %c0_3 = arith.constant 0 : index
    %c0_4 = arith.constant 0 : index
    %3 = vector.load %arg3[%c0_3, %c0_4] : memref<1x16xf32, #tpu.memory_space<vmem>>, vector<1x16xf32>
    %4 = vector.broadcast %3 : vector<1x16xf32> to vector<16x16xf32>
    %5 = arith.addf %2, %4 : vector<16x16xf32>
    %c0_5 = arith.constant 0 : index
    %c0_6 = arith.constant 0 : index
    %6 = vector.load %arg4[%c0_5, %c0_6] : memref<16x16xf32, #tpu.memory_space<vmem>>, vector<16x16xf32>
    tpu.vector_store %arg4[%c0_5, %c0_6], %5 {strides = array<i32>} : memref<16x16xf32, #tpu.memory_space<vmem>>, vector<16x16xf32>,
    return
  }
  func.func @transform_0(%arg0: i32) -> (i32, i32) {
    %c0_i32 = arith.constant 0 : i32
    %c0_i32_0 = arith.constant 0 : i32
    return %arg0, %c0_i32 : i32, i32
  }
  func.func @transform_1(%arg0: i32) -> (i32, i32) {
    %c0_i32 = arith.constant 0 : i32
    %c0_i32_0 = arith.constant 0 : i32
    %c0_i32_1 = arith.constant 0 : i32
    return %c0_i32, %c0_i32_0 : i32, i32
  }
  func.func @transform_2(%arg0: i32) -> (i32, i32) {
    %c0_i32 = arith.constant 0 : i32
    %c0_i32_0 = arith.constant 0 : i32
    %c0_i32_1 = arith.constant 0 : i32
    return %c0_i32, %c0_i32_0 : i32, i32
  }
  func.func @transform_3(%arg0: i32) -> (i32, i32) {
    %c0_i32 = arith.constant 0 : i32
    %c0_i32_0 = arith.constant 0 : i32
    return %arg0, %c0_i32 : i32, i32
  }
}

</mosaic_0001>

<bundles_post_ra>
// kernel: tt_layer_forward.1
= control target key start
LH: loop header
LB: loop body
LE: loop exit
PB: predicated region body
PF: predicated region fallthrough
CT: control target
= control target key end

     0   :  { %vm28_vm0 = vcmask 261120   ;;  %s240_s0 = inlined_call_operand.vmem [shape: f32[16,32], index: 0, kind: input, shape index: {}]   ;;  %s241_s1 = inlined_call_operand.vmem [shape: f32[32,16], index: 1, kind: input, shape index: {}]   ;;  %s242_s2 = inlined_call_operand.vmem [shape: f32[1,16], index: 2, kind: input, shape index: {}]   ;;  %s243_s3 = inlined_call_operand.hbm [shape: f32[16,16], index: 3, kind: output, shape index: {}]  }
   0x1   :  { %v17_v0 = vld [vmem:[%s241_s1] sm:$0xff]  ;;  %v18_v1 = vld [vmem:[%s241_s1 + $0x8] sm:$0xff]  ;;  %v19_v2 = vld [vmem:[%s241_s1 + $0x10] sm:$0xff] }
   0x2   :  { %v149_v3 = vpack.c.bf16 %v18_v1, %v17_v0  ;;  %v20_v4 = vld [vmem:[%s241_s1 + $0x18] sm:$0xff]  ;;  %v15_v5 = vld [vmem:[%s240_s0] sm:$0xff] }
   0x3   :  { %v153_v6 = vpack.c.bf16 %v20_v4, %v19_v2  ;;  %146 = vmatprep.mubr.msk.f32.mxu0 %vm28_vm0, %v15_v5 }
   0x4   :  { %8 = vsyncpa [#allocation3], 0  ;;  %150 = vmatprep.subr.bf16.mxu0 %v149_v3  ;;  %v16_v7 = vld [vmem:[%s240_s0 + $0x8] sm:$0xff]  ;;  %v129_v8 = vld [vmem:[%s242_s2] ss:$0 sm:$0xff]  ;;  %s184_s1 = smov [#allocation2]  }
   0x5   :  { %152 = vmatpush3.bf16.msra.mxu0 %v149_v3  ;;  %s118_s26 = sshll.u32 %s184_s1, 4  ;;  %vm110_vm1 = vcmask 130048   ;;  %s119_s26 = int_to_ptr.vmem [resolvable:$true] %s118_s26 }
   0x6   :  { %154 = vmatprep.subr.bf16.mxu0 %v153_v6  ;;  %s160_s27 = scalar_lea.vmem %s119_s26, 256  ;;  %p165_p1 = scmp.lt.s32.totalorder %s119_s26, %s119_s26 }
   0x7   :  { %p161_p0 = scmp.ne.s32.totalorder %s119_s26, %s160_s27  ;;  %p166_p2 = scmp.lt.s32.totalorder %s160_s27, %s160_s27 }
   0x9   :  { %156 = vmatpush3.bf16.msra.mxu0 %v153_v6  ;;  %p167_p3 = por %p166_p2, %p165_p1 }
   0xb   :  { %p168_p4 = pnand %p167_p3, %p161_p0 }
   0xc   :  { %147 = vmatmul.mubr.msk.f32.vlgmr.msra.gmra.mrb[0].mxu0 %vm28_vm0, %v16_v7 }
  0xdf   :  { %v148_v9 = vpop.f32.mrb[0].mxu0 }
  0xe0   :  { %v107_v10 = vadd.f32 %v148_v9, %v129_v8  ;;  %v101_v11 = vpop.f32.mrb[1].mxu0 }
  0xe1   :  { %v102_v12 = vadd.f32 %v129_v8, %v101_v11 }
  0xe2   :  { %112 = vst.msk [vmem:[#allocation2 + $0x8] sm:$0xff] %vm110_vm1, %v107_v10 }
  0xe3   :  { %111 = vst.msk [vmem:[#allocation2] sm:$0xff] %vm110_vm1, %v102_v12 }
  0xe4   :  { %171 = shalt.err (!%p168_p4)
}
  0xe5   :  { %s172_s2 = scalar_lea.hbm %s243_s3, 256 }
  0xe6   :  { %p173_p5 = scmp.ne.s32.totalorder %s243_s3, %s172_s2  ;;  %p176_p6 = scmp.lt.u32.totalorder %s172_s2, %s243_s3 }
  0xe8   :  { %p178_p7 = pnand %p176_p6, %p173_p5 }
  0xea   :  { %181 = shalt.err (!%p178_p7)
}
  0xeb   :  { %s185_s6 = smov 128   ;;  %s186_s7 = smov 8  }
  0xec   :  { %124 = dma.vmem_to_hbm [thread:$0]  %s119_s26, 256, %s243_s3, [#allocation3], %s185_s6, %s185_s6, %s186_s7  }
  0xed   :  { %182 = dma.done.wait [#allocation3], 256  }
  0xee   :  { %183 = vsyncadd [#allocation3], 4294967040 }
  0xef   :  { %128 = vsyncpa [#allocation3], 1 }

</bundles_post_ra>
